<compile_context>
chip_gen: v7x
topology: tpu7x:2x2x1
jax: 0.10.0
libtpu: 0.0.40
codegen_flags: <defaults>
</compile_context>

<pallas_src>
import jax
import jax.numpy as jnp
from jax.experimental import pallas as pl
from jax.experimental.pallas import tpu as pltpu


def _glm_kernel(x_ref, w_ref, b_ref, o_ref):
    # x_ref: [B, D] (VMEM), w_ref: [1, D] (VMEM, PyTorch [O, D] layout with O==1)
    # b_ref: [1]    (SMEM scalar), o_ref: [B, 1] (VMEM)
    prod = x_ref[...] * w_ref[...]                  # VPU: [1,D] broadcast over [B,D]
    y = jnp.sum(prod, axis=-1, keepdims=True)       # XLU lane reduce -> [B, 1]
    y = y + b_ref[0]                                # scalar bias from SMEM (VALU)
    o_ref[...] = jax.nn.sigmoid(y).astype(o_ref.dtype)  # exp on EUP


def glm_forward(x, weight, bias):
    """x: [B, D] f32, weight: [O, D] f32 (PyTorch layout, O == 1), bias: [O] f32 -> [B, O] f32."""
    B, D = x.shape
    O, Dw = weight.shape
    assert D == Dw
    assert O == 1, "this GLM kernel is specialized for output_dim == 1 (VPU dot product)"

    return pl.pallas_call(
        _glm_kernel,
        out_shape=jax.ShapeDtypeStruct((B, O), jnp.float32),
        grid=(1,),
        in_specs=[
            pl.BlockSpec((B, D), lambda i: (0, 0)),                       # activations
            pl.BlockSpec((O, D), lambda i: (0, 0)),                       # weight row, no transpose
            pl.BlockSpec(memory_space=pltpu.MemorySpace.SMEM),            # bias scalar in SMEM
        ],
        out_specs=pl.BlockSpec((B, O), lambda i: (0, 0)),
    )(x, weight, bias)


if __name__ == "__main__":
    input_dim = 300
    output_dim = 1
    batch = 8

    key = jax.random.PRNGKey(0)
    kx, kw, kb = jax.random.split(key, 3)

    # Deterministic init mimicking nn.Linear default: U(-1/sqrt(D), 1/sqrt(D))
    bound = 1.0 / (input_dim ** 0.5)
    weight = jax.random.uniform(kw, (output_dim, input_dim),
                                minval=-bound, maxval=bound, dtype=jnp.float32)
    bias = jax.random.uniform(kb, (output_dim,),
                              minval=-bound, maxval=bound, dtype=jnp.float32)
    x = jax.random.normal(kx, (batch, input_dim), dtype=jnp.float32)

    out = glm_forward(x, weight, bias)
    out = jax.block_until_ready(out)

    # Reference check against plain JAX (same math as torch.sigmoid(nn.Linear(x)))
    ref = jax.nn.sigmoid(x @ weight.T + bias)
    assert out.shape == (batch, output_dim)
    assert jnp.allclose(out, ref, atol=1e-5, rtol=1e-5)

    print("KERNEL_OK")
</pallas_src>

<mosaic_0001>
module attributes {stable_mosaic.version = 11 : i64} {
  func.func @_glm_kernel(%arg0: i32, %arg1: memref<8x300xf32, #tpu.memory_space<vmem>>, %arg2: memref<1x300xf32, #tpu.memory_space<vmem>>, %arg3: memref<1xf32, #tpu.memory_space<smem>>, %arg4: memref<8x1xf32, #tpu.memory_space<vmem>>) attributes {dimension_semantics = [#tpu.dimension_semantics<arbitrary>], iteration_bounds = array<i64: 1>, scalar_prefetch = 0 : i64, scratch_operands = 0 : i64, tpu.core_type = #tpu.core_type<tc>, window_params = [{pipeline_mode = #tpu.pipeline_mode<synchronous>, transform_indices = @transform_0, window_bounds = array<i64: 8, 300>}, {pipeline_mode = #tpu.pipeline_mode<synchronous>, transform_indices = @transform_1, window_bounds = array<i64: 1, 300>}, {transform_indices = @transform_2, window_bounds = array<i64: 1>}, {pipeline_mode = #tpu.pipeline_mode<synchronous>, transform_indices = @transform_3, window_bounds = array<i64: 8, 1>}]} {
    %c0 = arith.constant 0 : index
    %c0_0 = arith.constant 0 : index
    %0 = vector.load %arg1[%c0, %c0_0] : memref<8x300xf32, #tpu.memory_space<vmem>>, vector<8x300xf32>
    %c0_1 = arith.constant 0 : index
    %c0_2 = arith.constant 0 : index
    %1 = vector.load %arg2[%c0_1, %c0_2] : memref<1x300xf32, #tpu.memory_space<vmem>>, vector<1x300xf32>
    %2 = vector.broadcast %1 : vector<1x300xf32> to vector<8x300xf32>
    %3 = arith.mulf %0, %2 : vector<8x300xf32>
    %cst = arith.constant dense<0.000000e+00> : vector<8xf32>
    %4 = vector.multi_reduction <add>, %3, %cst [1] : vector<8x300xf32> to vector<8xf32>
    %5 = vector.shape_cast %4 : vector<8xf32> to vector<8x1xf32>
    %c0_3 = arith.constant 0 : index
    %6 = memref.load %arg3[%c0_3] : memref<1xf32, #tpu.memory_space<smem>>
    %7 = vector.broadcast %6 : f32 to vector<8x1xf32>
    %8 = arith.addf %5, %7 : vector<8x1xf32>
    %9 = arith.negf %8 : vector<8x1xf32>
    %10 = math.exp %9 : vector<8x1xf32>
    %cst_4 = arith.constant 1.000000e+00 : f32
    %11 = vector.broadcast %cst_4 : f32 to vector<8x1xf32>
    %12 = arith.addf %11, %10 : vector<8x1xf32>
    %13 = arith.divf %11, %12 : vector<8x1xf32>
    %c0_5 = arith.constant 0 : index
    %c0_6 = arith.constant 0 : index
    %14 = vector.load %arg4[%c0_5, %c0_6] : memref<8x1xf32, #tpu.memory_space<vmem>>, vector<8x1xf32>
    tpu.vector_store %arg4[%c0_5, %c0_6], %13 {strides = array<i32>} : memref<8x1xf32, #tpu.memory_space<vmem>>, vector<8x1xf32>,
    return
  }
  func.func @transform_0(%arg0: i32) -> (i32, i32) {
    %c0_i32 = arith.constant 0 : i32
    %c0_i32_0 = arith.constant 0 : i32
    %c0_i32_1 = arith.constant 0 : i32
    return %c0_i32, %c0_i32_0 : i32, i32
  }
  func.func @transform_1(%arg0: i32) -> (i32, i32) {
    %c0_i32 = arith.constant 0 : i32
    %c0_i32_0 = arith.constant 0 : i32
    %c0_i32_1 = arith.constant 0 : i32
    return %c0_i32, %c0_i32_0 : i32, i32
  }
  func.func @transform_2(%arg0: i32) -> i32 {
    %c0_i32 = arith.constant 0 : i32
    %c0_i32_0 = arith.constant 0 : i32
    return %c0_i32 : i32
  }
  func.func @transform_3(%arg0: i32) -> (i32, i32) {
    %c0_i32 = arith.constant 0 : i32
    %c0_i32_0 = arith.constant 0 : i32
    %c0_i32_1 = arith.constant 0 : i32
    return %c0_i32, %c0_i32_0 : i32, i32
  }
}

</mosaic_0001>

<bundles_post_ra>
// kernel: tpu_custom_call.1
= control target key start
LH: loop header
LB: loop body
LE: loop exit
PB: predicated region body
PF: predicated region fallthrough
CT: control target
= control target key end

     0   :  { %9 = vsyncpa [#allocation4], 0  ;;  %s102_s12 = smov [#allocation3]   ;;  %s144_s0 = inlined_call_operand.hbm [shape: f32[8,300], index: 0, kind: input, shape index: {}]   ;;  %s145_s1 = inlined_call_operand.vmem [shape: f32[1,300], index: 1, kind: input, shape index: {}]   ;;  %s146_s2 = inlined_call_operand.<no memory space> [shape: f32[1], index: 2, kind: input, shape index: {}]   ;;  %s147_s3 = inlined_call_operand.vmem [shape: f32[8,1], index: 3, kind: output, shape index: {}]  }
   0x1   :  { %s16_s13 = sshll.u32 %s102_s12, 4  ;;  %s78_s16 = scalar_lea.hbm %s144_s0, 384  ;;  %s17_s13 = int_to_ptr.vmem [resolvable:$true] %s16_s13 }
   0x2   :  { %p79_p0 = scmp.ne.s32.totalorder %s144_s0, %s78_s16  ;;  %p82_p1 = scmp.lt.u32.totalorder %s78_s16, %s144_s0 }
   0x4   :  { %p84_p2 = pnand %p82_p1, %p79_p0 }
   0x6   :  { %87 = shalt.err (!%p84_p2)
}
   0x7   :  { %s88_s21 = scalar_lea.vmem %s17_s13, 384  ;;  %p93_p4 = scmp.lt.s32.totalorder %s17_s13, %s17_s13 }
   0x8   :  { %p89_p3 = scmp.ne.s32.totalorder %s17_s13, %s88_s21  ;;  %p94_p5 = scmp.lt.s32.totalorder %s88_s21, %s88_s21 }
   0xa   :  { %p95_p6 = por %p94_p5, %p93_p4 }
   0xc   :  { %p96_p7 = pnand %p95_p6, %p89_p3 }
   0xe   :  { %99 = shalt.err (!%p96_p7)
}
   0xf   :  { %19 = dma.hbm_to_vmem [thread:$0]  %s144_s0, 384, %s17_s13, [#allocation4]  }
  0x10   :  { %100 = dma.done.wait [#allocation4], 384  }
  0x11   :  { %101 = vsyncadd [#allocation4], 4294966912  ;;  %v32_v0 = vlaneseq  ;;  %v27_v5 = vld [vmem:[#allocation3] sm:$0xff]  ;;  %v28_v6 = vld [vmem:[#allocation3 + $0x8] sm:$0xff]  ;;  %vm51_vm0 = vcmask 359424   ;;  %v57_v18 = vstv %s146_s2  ;;  %vm65_vm1 = vcmask 7168  }
  0x12   :  { %v29_v7 = vld [vmem:[#allocation3 + $0x10] sm:$0xff]  ;;  %v30_v8 = vld [vmem:[%s145_s1] sm:$0x7] }
  0x13   :  { %v33_v1 = vshrl.u32 %v32_v0, 7 }
  0x15   :  { %v34_v2 = vsub.s32 0, %v33_v1  ;;  %v38_v3 = vsub.s32 1, %v33_v1  ;;  %v42_v4 = vsub.s32 2, %v33_v1 }
  0x17   :  { %v35_v9 = vrot.slane %v30_v8, %v34_v2  ;;  %v39_v10 = vrot.slane %v30_v8, %v38_v3  ;;  %v43_v11 = vrot.slane %v30_v8, %v42_v4 }
  0x19   :  { %v47_v12 = vmul.f32 %v35_v9, %v27_v5  ;;  %v48_v13 = vmul.f32 %v39_v10, %v28_v6  ;;  %v49_v14 = vmul.f32 %v43_v11, %v29_v7 }
  0x1b   :  { %v50_v15 = vadd.f32 %v48_v13, %v47_v12  ;;  %v52_v16 = vsel %vm51_vm0, %v49_v14, 0.0 }
  0x1d   :  { %v53_v17 = vadd.f32 %v52_v16, %v50_v15 }
  0x1f   :  { %54 = vadd.xlane.f32.xlu0 %v53_v17 }
  0xac   :  { %v55_v19 = vpop.xlane.xlu0 %54 }
  0xad   :  { %v58_v20 = vadd.f32 %v57_v18, %v55_v19 }
  0xaf   :  { %v72_v21 = vmul.f32 -1.442695, %v58_v20 }
  0xb1   :  { %74 = vpow2.f32 %v72_v21 }
  0xbb   :  { %v75_v22 = vpop.eup %74 }
  0xbc   :  { %v62_v23 = vadd.f32 1.0, %v75_v22 }
  0xbe   :  { %76 = vrcp.f32 %v62_v23 }
  0xc8   :  { %v77_v24 = vpop.eup %76 }
  0xc9   :  { %66 = vst.msk [vmem:[%s147_s3] sm:$0xff] %vm65_vm1, %v77_v24 }
  0xca   :  { %71 = vsyncpa [#allocation4], 1 }

</bundles_post_ra>
